<compile_context>
chip_gen: v7x
topology: tpu7x:2x2x1
jax: 0.10.0
libtpu: 0.0.40
codegen_flags: <defaults>
</compile_context>

<pallas_src>
import functools

import jax
import jax.numpy as jnp
from jax.experimental import pallas as pl
from jax.experimental.pallas import tpu as pltpu


# ---------------------------------------------------------------------------
# Fused Pallas kernel: whole VAE forward on one batch tile
# ---------------------------------------------------------------------------
def _vae_fused_kernel(*refs, n_enc: int, n_dec: int):
    """refs = [x, eps,
               (W,b) * n_enc,                 # encoder, leaky_relu
               W_muvar, b_muvar,              # merged fc_mu|fc_var head
               (W,b) * n_dec,                 # decoder, leaky_relu
               W_final, b_final,              # final, sigmoid
               recon_out, muvar_out]
    """
    idx = 0
    x_ref = refs[idx]; idx += 1
    eps_ref = refs[idx]; idx += 1
    enc = []
    for _ in range(n_enc):
        enc.append((refs[idx], refs[idx + 1])); idx += 2
    w_mv, b_mv = refs[idx], refs[idx + 1]; idx += 2
    dec = []
    for _ in range(n_dec):
        dec.append((refs[idx], refs[idx + 1])); idx += 2
    w_fin, b_fin = refs[idx], refs[idx + 1]; idx += 2
    recon_ref, muvar_ref = refs[idx], refs[idx + 1]

    def leaky(y):
        return jnp.where(y >= 0.0, y, 0.01 * y)

    # --- encoder: Linear + LeakyReLU stack --------------------------------
    h = x_ref[...]
    for w_ref, b_ref in enc:
        h = jnp.dot(h, w_ref[...], preferred_element_type=jnp.float32)
        h = leaky(h + b_ref[...])

    # --- latent head: merged mu|log_var matmul -----------------------------
    muvar = jnp.dot(h, w_mv[...], preferred_element_type=jnp.float32) + b_mv[...]
    muvar_ref[...] = muvar.astype(muvar_ref.dtype)

    latent_dim = eps_ref.shape[-1]
    mu = muvar[:, :latent_dim]
    log_var = muvar[:, latent_dim:]

    # --- reparameterize: z = eps * exp(0.5*logvar) + mu --------------------
    z = eps_ref[...] * jnp.exp(0.5 * log_var) + mu

    # --- decoder: Linear + LeakyReLU stack ---------------------------------
    h = z
    for w_ref, b_ref in dec:
        h = jnp.dot(h, w_ref[...], preferred_element_type=jnp.float32)
        h = leaky(h + b_ref[...])

    # --- final: Linear + Sigmoid -------------------------------------------
    y = jnp.dot(h, w_fin[...], preferred_element_type=jnp.float32) + b_fin[...]
    recon_ref[...] = jax.nn.sigmoid(y).astype(recon_ref.dtype)


# ---------------------------------------------------------------------------
# Wrapper: one pallas_call for the whole forward pass
# ---------------------------------------------------------------------------
def _round_up(a, m):
    return (a + m - 1) // m * m


def vae_forward(params, x, eps):
    B, input_dim = x.shape
    latent_dim = eps.shape[1]

    # Batch tiling: tile of up to 256 rows (MXU row width on v6e/v7x),
    # multiple of 8 (sublane). Pad the batch so the grid divides evenly.
    tb = 256 if B >= 256 else _round_up(B, 8)
    b_pad = _round_up(B, tb)
    if b_pad != B:
        pad = b_pad - B
        x_p = jnp.pad(x, ((0, pad), (0, 0)))
        eps_p = jnp.pad(eps, ((0, pad), (0, 0)))
    else:
        x_p, eps_p = x, eps

    n_enc = len(params["encoder"])
    n_dec = len(params["decoder"])

    # ---- flatten inputs + build specs -------------------------------------
    flat_inputs = [x_p, eps_p]
    in_specs = [
        pl.BlockSpec((tb, input_dim), lambda i: (i, 0)),
        pl.BlockSpec((tb, latent_dim), lambda i: (i, 0)),
    ]

    def add_param(w, b):
        flat_inputs.extend([w, b])
        # constant block index -> weights stay resident across batch tiles
        in_specs.append(pl.BlockSpec(w.shape, lambda i: (0, 0)))
        in_specs.append(pl.BlockSpec(b.shape, lambda i: (0, 0)))

    for w, b in params["encoder"]:
        add_param(w, b)
    add_param(*params["fc_mu_var"])
    for w, b in params["decoder"]:
        add_param(w, b)
    add_param(*params["final"])

    # ---- cost estimate -----------------------------------------------------
    flops = 0
    param_bytes = 0
    for w in flat_inputs[2::2]:          # weight matrices only
        flops += 2 * b_pad * w.shape[0] * w.shape[1]
    for a in flat_inputs[2:]:
        param_bytes += a.size * 4
    bytes_accessed = (
        param_bytes
        + (x_p.size + eps_p.size) * 4                       # inputs
        + b_pad * (input_dim + 2 * latent_dim) * 4          # outputs
    )
    transcendentals = b_pad * (latent_dim + input_dim)      # exp + sigmoid

    kernel = functools.partial(_vae_fused_kernel, n_enc=n_enc, n_dec=n_dec)

    recon, muvar = pl.pallas_call(
        kernel,
        out_shape=(
            jax.ShapeDtypeStruct((b_pad, input_dim), jnp.float32),
            jax.ShapeDtypeStruct((b_pad, 2 * latent_dim), jnp.float32),
        ),
        grid=(b_pad // tb,),
        in_specs=in_specs,
        out_specs=(
            pl.BlockSpec((tb, input_dim), lambda i: (i, 0)),
            pl.BlockSpec((tb, 2 * latent_dim), lambda i: (i, 0)),
        ),
        compiler_params=pltpu.CompilerParams(
            dimension_semantics=("parallel",)),
        cost_estimate=pl.CostEstimate(
            flops=flops,
            transcendentals=transcendentals,
            bytes_accessed=bytes_accessed),
    )(*flat_inputs)

    recon = recon[:B]
    mu = muvar[:B, :latent_dim]
    log_var = muvar[:B, latent_dim:]
    return recon, x, mu, log_var


# ---------------------------------------------------------------------------
# Parameter construction (deterministic, PyTorch-Linear-style uniform init)
# ---------------------------------------------------------------------------
def _init_linear(key, d_in, d_out):
    kw, kb = jax.random.split(key)
    bound = 1.0 / jnp.sqrt(jnp.float32(d_in))
    w = jax.random.uniform(kw, (d_in, d_out), jnp.float32, -bound, bound)
    b = jax.random.uniform(kb, (1, d_out), jnp.float32, -bound, bound)
    return w, b


def build_params(key, input_dim, latent_dim, hidden_dims):
    params = {}
    keys = jax.random.split(key, 2 * len(hidden_dims) + 4)
    ki = iter(keys)

    # encoder: input_dim -> hidden_dims[0] -> ... -> hidden_dims[-1]
    enc = []
    d = input_dim
    for h in hidden_dims:
        enc.append(_init_linear(next(ki), d, h))
        d = h
    params["encoder"] = enc

    # merged latent head: [mu | log_var] along the output axis
    w_mu, b_mu = _init_linear(next(ki), hidden_dims[-1], latent_dim)
    w_var, b_var = _init_linear(next(ki), hidden_dims[-1], latent_dim)
    params["fc_mu_var"] = (
        jnp.concatenate([w_mu, w_var], axis=1),
        jnp.concatenate([b_mu, b_var], axis=1),
    )

    # decoder: latent_dim -> hidden_dims[::-1]  (i.e. ... -> hidden_dims[0])
    dec = []
    d = latent_dim
    for h in hidden_dims[::-1]:
        dec.append(_init_linear(next(ki), d, h))
        d = h
    params["decoder"] = dec

    # final: hidden_dims[0] -> input_dim, sigmoid
    params["final"] = _init_linear(next(ki), hidden_dims[0], input_dim)
    return params


# ---------------------------------------------------------------------------
# Demo
# ---------------------------------------------------------------------------
if __name__ == "__main__":
    INPUT_DIM = 256
    LATENT_DIM = 16
    HIDDEN_DIMS = [128, 64, 32]
    BATCH = 8

    root = jax.random.PRNGKey(0)
    k_params, k_x, k_eps = jax.random.split(root, 3)

    params = build_params(k_params, INPUT_DIM, LATENT_DIM, HIDDEN_DIMS)
    x = jax.random.uniform(k_x, (BATCH, INPUT_DIM), jnp.float32)
    eps = jax.random.normal(k_eps, (BATCH, LATENT_DIM), jnp.float32)

    fwd = jax.jit(vae_forward)
    recon, x_out, mu, log_var = fwd(params, x, eps)
    jax.block_until_ready((recon, x_out, mu, log_var))

    assert recon.shape == (BATCH, INPUT_DIM)
    assert x_out.shape == (BATCH, INPUT_DIM)
    assert mu.shape == (BATCH, LATENT_DIM)
    assert log_var.shape == (BATCH, LATENT_DIM)
    assert bool(jnp.all((recon >= 0.0) & (recon <= 1.0)))
    assert bool(jnp.all(jnp.isfinite(recon)))
    assert bool(jnp.all(jnp.isfinite(mu))) and bool(jnp.all(jnp.isfinite(log_var)))

    print("KERNEL_OK")
</pallas_src>

<mosaic_0001>
module attributes {stable_mosaic.version = 11 : i64} {
  func.func @_vae_fused_kernel(%arg0: i32, %arg1: memref<8x256xf32, #tpu.memory_space<vmem>>, %arg2: memref<8x16xf32, #tpu.memory_space<vmem>>, %arg3: memref<256x128xf32, #tpu.memory_space<vmem>>, %arg4: memref<1x128xf32, #tpu.memory_space<vmem>>, %arg5: memref<128x64xf32, #tpu.memory_space<vmem>>, %arg6: memref<1x64xf32, #tpu.memory_space<vmem>>, %arg7: memref<64x32xf32, #tpu.memory_space<vmem>>, %arg8: memref<1x32xf32, #tpu.memory_space<vmem>>, %arg9: memref<32x32xf32, #tpu.memory_space<vmem>>, %arg10: memref<1x32xf32, #tpu.memory_space<vmem>>, %arg11: memref<16x32xf32, #tpu.memory_space<vmem>>, %arg12: memref<1x32xf32, #tpu.memory_space<vmem>>, %arg13: memref<32x64xf32, #tpu.memory_space<vmem>>, %arg14: memref<1x64xf32, #tpu.memory_space<vmem>>, %arg15: memref<64x128xf32, #tpu.memory_space<vmem>>, %arg16: memref<1x128xf32, #tpu.memory_space<vmem>>, %arg17: memref<128x256xf32, #tpu.memory_space<vmem>>, %arg18: memref<1x256xf32, #tpu.memory_space<vmem>>, %arg19: memref<8x256xf32, #tpu.memory_space<vmem>>, %arg20: memref<8x32xf32, #tpu.memory_space<vmem>>) attributes {dimension_semantics = [#tpu.dimension_semantics<parallel>], iteration_bounds = array<i64: 1>, scalar_prefetch = 0 : i64, scratch_operands = 0 : i64, tpu.core_type = #tpu.core_type<tc>, window_params = [{transform_indices = @transform_0, window_bounds = array<i64: 8, 256>}, {transform_indices = @transform_1, window_bounds = array<i64: 8, 16>}, {pipeline_mode = #tpu.pipeline_mode<synchronous>, transform_indices = @transform_2, window_bounds = array<i64: 256, 128>}, {pipeline_mode = #tpu.pipeline_mode<synchronous>, transform_indices = @transform_3, window_bounds = array<i64: 1, 128>}, {pipeline_mode = #tpu.pipeline_mode<synchronous>, transform_indices = @transform_4, window_bounds = array<i64: 128, 64>}, {pipeline_mode = #tpu.pipeline_mode<synchronous>, transform_indices = @transform_5, window_bounds = array<i64: 1, 64>}, {pipeline_mode = #tpu.pipeline_mode<synchronous>, transform_indices = @transform_6, window_bounds = array<i64: 64, 32>}, {pipeline_mode = #tpu.pipeline_mode<synchronous>, transform_indices = @transform_7, window_bounds = array<i64: 1, 32>}, {pipeline_mode = #tpu.pipeline_mode<synchronous>, transform_indices = @transform_8, window_bounds = array<i64: 32, 32>}, {pipeline_mode = #tpu.pipeline_mode<synchronous>, transform_indices = @transform_9, window_bounds = array<i64: 1, 32>}, {pipeline_mode = #tpu.pipeline_mode<synchronous>, transform_indices = @transform_10, window_bounds = array<i64: 16, 32>}, {pipeline_mode = #tpu.pipeline_mode<synchronous>, transform_indices = @transform_11, window_bounds = array<i64: 1, 32>}, {pipeline_mode = #tpu.pipeline_mode<synchronous>, transform_indices = @transform_12, window_bounds = array<i64: 32, 64>}, {pipeline_mode = #tpu.pipeline_mode<synchronous>, transform_indices = @transform_13, window_bounds = array<i64: 1, 64>}, {pipeline_mode = #tpu.pipeline_mode<synchronous>, transform_indices = @transform_14, window_bounds = array<i64: 64, 128>}, {pipeline_mode = #tpu.pipeline_mode<synchronous>, transform_indices = @transform_15, window_bounds = array<i64: 1, 128>}, {pipeline_mode = #tpu.pipeline_mode<synchronous>, transform_indices = @transform_16, window_bounds = array<i64: 128, 256>}, {pipeline_mode = #tpu.pipeline_mode<synchronous>, transform_indices = @transform_17, window_bounds = array<i64: 1, 256>}, {transform_indices = @transform_18, window_bounds = array<i64: 8, 256>}, {transform_indices = @transform_19, window_bounds = array<i64: 8, 32>}]} {
    %c0 = arith.constant 0 : index
    %c0_0 = arith.constant 0 : index
    %0 = vector.load %arg1[%c0, %c0_0] : memref<8x256xf32, #tpu.memory_space<vmem>>, vector<8x256xf32>
    %c0_1 = arith.constant 0 : index
    %c0_2 = arith.constant 0 : index
    %1 = vector.load %arg3[%c0_1, %c0_2] : memref<256x128xf32, #tpu.memory_space<vmem>>, vector<256x128xf32>
    %cst = arith.constant dense<0.000000e+00> : vector<8x128xf32>
    %2 = tpu.matmul %0, %1, %cst {dimension_numbers = #tpu.dot_dimension_numbers<[1], [0], [0], [1], [0, 0, 1, 1], [], []>} : vector<8x256xf32>, vector<256x128xf32>, vector<8x128xf32> -> vector<8x128xf32>
    %c0_3 = arith.constant 0 : index
    %c0_4 = arith.constant 0 : index
    %3 = vector.load %arg4[%c0_3, %c0_4] : memref<1x128xf32, #tpu.memory_space<vmem>>, vector<1x128xf32>
    %4 = vector.broadcast %3 : vector<1x128xf32> to vector<8x128xf32>
    %5 = arith.addf %2, %4 : vector<8x128xf32>
    %cst_5 = arith.constant 0.000000e+00 : f32
    %6 = vector.broadcast %cst_5 : f32 to vector<8x128xf32>
    %7 = arith.cmpf oge, %5, %6 : vector<8x128xf32>
    %cst_6 = arith.constant 0.00999999977 : f32
    %8 = vector.broadcast %cst_6 : f32 to vector<8x128xf32>
    %9 = arith.mulf %8, %5 : vector<8x128xf32>
    %10 = arith.select %7, %5, %9 : vector<8x128xi1>, vector<8x128xf32>
    %c0_7 = arith.constant 0 : index
    %c0_8 = arith.constant 0 : index
    %11 = vector.load %arg5[%c0_7, %c0_8] : memref<128x64xf32, #tpu.memory_space<vmem>>, vector<128x64xf32>
    %cst_9 = arith.constant dense<0.000000e+00> : vector<8x64xf32>
    %12 = tpu.matmul %10, %11, %cst_9 {dimension_numbers = #tpu.dot_dimension_numbers<[1], [0], [0], [1], [0, 0, 1, 1], [], []>} : vector<8x128xf32>, vector<128x64xf32>, vector<8x64xf32> -> vector<8x64xf32>
    %c0_10 = arith.constant 0 : index
    %c0_11 = arith.constant 0 : index
    %13 = vector.load %arg6[%c0_10, %c0_11] : memref<1x64xf32, #tpu.memory_space<vmem>>, vector<1x64xf32>
    %14 = vector.broadcast %13 : vector<1x64xf32> to vector<8x64xf32>
    %15 = arith.addf %12, %14 : vector<8x64xf32>
    %cst_12 = arith.constant 0.000000e+00 : f32
    %16 = vector.broadcast %cst_12 : f32 to vector<8x64xf32>
    %17 = arith.cmpf oge, %15, %16 : vector<8x64xf32>
    %cst_13 = arith.constant 0.00999999977 : f32
    %18 = vector.broadcast %cst_13 : f32 to vector<8x64xf32>
    %19 = arith.mulf %18, %15 : vector<8x64xf32>
    %20 = arith.select %17, %15, %19 : vector<8x64xi1>, vector<8x64xf32>
    %c0_14 = arith.constant 0 : index
    %c0_15 = arith.constant 0 : index
    %21 = vector.load %arg7[%c0_14, %c0_15] : memref<64x32xf32, #tpu.memory_space<vmem>>, vector<64x32xf32>
    %cst_16 = arith.constant dense<0.000000e+00> : vector<8x32xf32>
    %22 = tpu.matmul %20, %21, %cst_16 {dimension_numbers = #tpu.dot_dimension_numbers<[1], [0], [0], [1], [0, 0, 1, 1], [], []>} : vector<8x64xf32>, vector<64x32xf32>, vector<8x32xf32> -> vector<8x32xf32>
    %c0_17 = arith.constant 0 : index
    %c0_18 = arith.constant 0 : index
    %23 = vector.load %arg8[%c0_17, %c0_18] : memref<1x32xf32, #tpu.memory_space<vmem>>, vector<1x32xf32>
    %24 = vector.broadcast %23 : vector<1x32xf32> to vector<8x32xf32>
    %25 = arith.addf %22, %24 : vector<8x32xf32>
    %cst_19 = arith.constant 0.000000e+00 : f32
    %26 = vector.broadcast %cst_19 : f32 to vector<8x32xf32>
    %27 = arith.cmpf oge, %25, %26 : vector<8x32xf32>
    %cst_20 = arith.constant 0.00999999977 : f32
    %28 = vector.broadcast %cst_20 : f32 to vector<8x32xf32>
    %29 = arith.mulf %28, %25 : vector<8x32xf32>
    %30 = arith.select %27, %25, %29 : vector<8x32xi1>, vector<8x32xf32>
    %c0_21 = arith.constant 0 : index
    %c0_22 = arith.constant 0 : index
    %31 = vector.load %arg9[%c0_21, %c0_22] : memref<32x32xf32, #tpu.memory_space<vmem>>, vector<32x32xf32>
    %cst_23 = arith.constant dense<0.000000e+00> : vector<8x32xf32>
    %32 = tpu.matmul %30, %31, %cst_23 {dimension_numbers = #tpu.dot_dimension_numbers<[1], [0], [0], [1], [0, 0, 1, 1], [], []>} : vector<8x32xf32>, vector<32x32xf32>, vector<8x32xf32> -> vector<8x32xf32>
    %c0_24 = arith.constant 0 : index
    %c0_25 = arith.constant 0 : index
    %33 = vector.load %arg10[%c0_24, %c0_25] : memref<1x32xf32, #tpu.memory_space<vmem>>, vector<1x32xf32>
    %34 = vector.broadcast %33 : vector<1x32xf32> to vector<8x32xf32>
    %35 = arith.addf %32, %34 : vector<8x32xf32>
    %c0_26 = arith.constant 0 : index
    %c0_27 = arith.constant 0 : index
    %36 = vector.load %arg20[%c0_26, %c0_27] : memref<8x32xf32, #tpu.memory_space<vmem>>, vector<8x32xf32>
    tpu.vector_store %arg20[%c0_26, %c0_27], %35 {strides = array<i32>} : memref<8x32xf32, #tpu.memory_space<vmem>>, vector<8x32xf32>,
    %37 = vector.extract_strided_slice %35 {offsets = [0, 0], sizes = [8, 16], strides = [1, 1]} : vector<8x32xf32> to vector<8x16xf32>
    %38 = vector.extract_strided_slice %35 {offsets = [0, 16], sizes = [8, 16], strides = [1, 1]} : vector<8x32xf32> to vector<8x16xf32>
    %c0_28 = arith.constant 0 : index
    %c0_29 = arith.constant 0 : index
    %39 = vector.load %arg2[%c0_28, %c0_29] : memref<8x16xf32, #tpu.memory_space<vmem>>, vector<8x16xf32>
    %cst_30 = arith.constant 5.000000e-01 : f32
    %40 = vector.broadcast %cst_30 : f32 to vector<8x16xf32>
    %41 = arith.mulf %40, %38 : vector<8x16xf32>
    %42 = math.exp %41 : vector<8x16xf32>
    %43 = arith.mulf %39, %42 : vector<8x16xf32>
    %44 = arith.addf %43, %37 : vector<8x16xf32>
    %c0_31 = arith.constant 0 : index
    %c0_32 = arith.constant 0 : index
    %45 = vector.load %arg11[%c0_31, %c0_32] : memref<16x32xf32, #tpu.memory_space<vmem>>, vector<16x32xf32>
    %cst_33 = arith.constant dense<0.000000e+00> : vector<8x32xf32>
    %46 = tpu.matmul %44, %45, %cst_33 {dimension_numbers = #tpu.dot_dimension_numbers<[1], [0], [0], [1], [0, 0, 1, 1], [], []>} : vector<8x16xf32>, vector<16x32xf32>, vector<8x32xf32> -> vector<8x32xf32>
    %c0_34 = arith.constant 0 : index
    %c0_35 = arith.constant 0 : index
    %47 = vector.load %arg12[%c0_34, %c0_35] : memref<1x32xf32, #tpu.memory_space<vmem>>, vector<1x32xf32>
    %48 = vector.broadcast %47 : vector<1x32xf32> to vector<8x32xf32>
    %49 = arith.addf %46, %48 : vector<8x32xf32>
    %cst_36 = arith.constant 0.000000e+00 : f32
    %50 = vector.broadcast %cst_36 : f32 to vector<8x32xf32>
    %51 = arith.cmpf oge, %49, %50 : vector<8x32xf32>
    %cst_37 = arith.constant 0.00999999977 : f32
    %52 = vector.broadcast %cst_37 : f32 to vector<8x32xf32>
    %53 = arith.mulf %52, %49 : vector<8x32xf32>
    %54 = arith.select %51, %49, %53 : vector<8x32xi1>, vector<8x32xf32>
    %c0_38 = arith.constant 0 : index
    %c0_39 = arith.constant 0 : index
    %55 = vector.load %arg13[%c0_38, %c0_39] : memref<32x64xf32, #tpu.memory_space<vmem>>, vector<32x64xf32>
    %cst_40 = arith.constant dense<0.000000e+00> : vector<8x64xf32>
    %56 = tpu.matmul %54, %55, %cst_40 {dimension_numbers = #tpu.dot_dimension_numbers<[1], [0], [0], [1], [0, 0, 1, 1], [], []>} : vector<8x32xf32>, vector<32x64xf32>, vector<8x64xf32> -> vector<8x64xf32>
    %c0_41 = arith.constant 0 : index
    %c0_42 = arith.constant 0 : index
    %57 = vector.load %arg14[%c0_41, %c0_42] : memref<1x64xf32, #tpu.memory_space<vmem>>, vector<1x64xf32>
    %58 = vector.broadcast %57 : vector<1x64xf32> to vector<8x64xf32>
    %59 = arith.addf %56, %58 : vector<8x64xf32>
    %cst_43 = arith.constant 0.000000e+00 : f32
    %60 = vector.broadcast %cst_43 : f32 to vector<8x64xf32>
    %61 = arith.cmpf oge, %59, %60 : vector<8x64xf32>
    %cst_44 = arith.constant 0.00999999977 : f32
    %62 = vector.broadcast %cst_44 : f32 to vector<8x64xf32>
    %63 = arith.mulf %62, %59 : vector<8x64xf32>
    %64 = arith.select %61, %59, %63 : vector<8x64xi1>, vector<8x64xf32>
    %c0_45 = arith.constant 0 : index
    %c0_46 = arith.constant 0 : index
    %65 = vector.load %arg15[%c0_45, %c0_46] : memref<64x128xf32, #tpu.memory_space<vmem>>, vector<64x128xf32>
    %cst_47 = arith.constant dense<0.000000e+00> : vector<8x128xf32>
    %66 = tpu.matmul %64, %65, %cst_47 {dimension_numbers = #tpu.dot_dimension_numbers<[1], [0], [0], [1], [0, 0, 1, 1], [], []>} : vector<8x64xf32>, vector<64x128xf32>, vector<8x128xf32> -> vector<8x128xf32>
    %c0_48 = arith.constant 0 : index
    %c0_49 = arith.constant 0 : index
    %67 = vector.load %arg16[%c0_48, %c0_49] : memref<1x128xf32, #tpu.memory_space<vmem>>, vector<1x128xf32>
    %68 = vector.broadcast %67 : vector<1x128xf32> to vector<8x128xf32>
    %69 = arith.addf %66, %68 : vector<8x128xf32>
    %cst_50 = arith.constant 0.000000e+00 : f32
    %70 = vector.broadcast %cst_50 : f32 to vector<8x128xf32>
    %71 = arith.cmpf oge, %69, %70 : vector<8x128xf32>
    %cst_51 = arith.constant 0.00999999977 : f32
    %72 = vector.broadcast %cst_51 : f32 to vector<8x128xf32>
    %73 = arith.mulf %72, %69 : vector<8x128xf32>
    %74 = arith.select %71, %69, %73 : vector<8x128xi1>, vector<8x128xf32>
    %c0_52 = arith.constant 0 : index
    %c0_53 = arith.constant 0 : index
    %75 = vector.load %arg17[%c0_52, %c0_53] : memref<128x256xf32, #tpu.memory_space<vmem>>, vector<128x256xf32>
    %cst_54 = arith.constant dense<0.000000e+00> : vector<8x256xf32>
    %76 = tpu.matmul %74, %75, %cst_54 {dimension_numbers = #tpu.dot_dimension_numbers<[1], [0], [0], [1], [0, 0, 1, 1], [], []>} : vector<8x128xf32>, vector<128x256xf32>, vector<8x256xf32> -> vector<8x256xf32>
    %c0_55 = arith.constant 0 : index
    %c0_56 = arith.constant 0 : index
    %77 = vector.load %arg18[%c0_55, %c0_56] : memref<1x256xf32, #tpu.memory_space<vmem>>, vector<1x256xf32>
    %78 = vector.broadcast %77 : vector<1x256xf32> to vector<8x256xf32>
    %79 = arith.addf %76, %78 : vector<8x256xf32>
    %80 = arith.negf %79 : vector<8x256xf32>
    %81 = math.exp %80 : vector<8x256xf32>
    %cst_57 = arith.constant 1.000000e+00 : f32
    %82 = vector.broadcast %cst_57 : f32 to vector<8x256xf32>
    %83 = arith.addf %82, %81 : vector<8x256xf32>
    %84 = arith.divf %82, %83 : vector<8x256xf32>
    %c0_58 = arith.constant 0 : index
    %c0_59 = arith.constant 0 : index
    %85 = vector.load %arg19[%c0_58, %c0_59] : memref<8x256xf32, #tpu.memory_space<vmem>>, vector<8x256xf32>
    tpu.vector_store %arg19[%c0_58, %c0_59], %84 {strides = array<i32>} : memref<8x256xf32, #tpu.memory_space<vmem>>, vector<8x256xf32>,
    return
  }
  func.func @transform_0(%arg0: i32) -> (i32, i32) {
    %c0_i32 = arith.constant 0 : i32
    %c0_i32_0 = arith.constant 0 : i32
    return %arg0, %c0_i32 : i32, i32
  }
  func.func @transform_1(%arg0: i32) -> (i32, i32) {
    %c0_i32 = arith.constant 0 : i32
    %c0_i32_0 = arith.constant 0 : i32
    return %arg0, %c0_i32 : i32, i32
  }
  func.func @transform_2(%arg0: i32) -> (i32, i32) {
    %c0_i32 = arith.constant 0 : i32
    %c0_i32_0 = arith.constant 0 : i32
    %c0_i32_1 = arith.constant 0 : i32
    return %c0_i32, %c0_i32_0 : i32, i32
  }
  func.func @transform_3(%arg0: i32) -> (i32, i32) {
    %c0_i32 = arith.constant 0 : i32
    %c0_i32_0 = arith.constant 0 : i32
    %c0_i32_1 = arith.constant 0 : i32
    return %c0_i32, %c0_i32_0 : i32, i32
  }
  func.func @transform_4(%arg0: i32) -> (i32, i32) {
    %c0_i32 = arith.constant 0 : i32
    %c0_i32_0 = arith.constant 0 : i32
    %c0_i32_1 = arith.constant 0 : i32
    return %c0_i32, %c0_i32_0 : i32, i32
  }
  func.func @transform_5(%arg0: i32) -> (i32, i32) {
    %c0_i32 = arith.constant 0 : i32
    %c0_i32_0 = arith.constant 0 : i32
    %c0_i32_1 = arith.constant 0 : i32
    return %c0_i32, %c0_i32_0 : i32, i32
  }
  func.func @transform_6(%arg0: i32) -> (i32, i32) {
    %c0_i32 = arith.constant 0 : i32
    %c0_i32_0 = arith.constant 0 : i32
    %c0_i32_1 = arith.constant 0 : i32
    return %c0_i32, %c0_i32_0 : i32, i32
  }
  func.func @transform_7(%arg0: i32) -> (i32, i32) {
    %c0_i32 = arith.constant 0 : i32
    %c0_i32_0 = arith.constant 0 : i32
    %c0_i32_1 = arith.constant 0 : i32
    return %c0_i32, %c0_i32_0 : i32, i32
  }
  func.func @transform_8(%arg0: i32) -> (i32, i32) {
    %c0_i32 = arith.constant 0 : i32
    %c0_i32_0 = arith.constant 0 : i32
    %c0_i32_1 = arith.constant 0 : i32
    return %c0_i32, %c0_i32_0 : i32, i32
  }
  func.func @transform_9(%arg0: i32) -> (i32, i32) {
    %c0_i32 = arith.constant 0 : i32
    %c0_i32_0 = arith.constant 0 : i32
    %c0_i32_1 = arith.constant 0 : i32
    return %c0_i32, %c0_i32_0 : i32, i32
  }
  func.func @transform_10(%arg0: i32) -> (i32, i32) {
    %c0_i32 = arith.constant 0 : i32
    %c0_i32_0 = arith.constant 0 : i32
    %c0_i32_1 = arith.constant 0 : i32
    return %c0_i32, %c0_i32_0 : i32, i32
  }
  func.func @transform_11(%arg0: i32) -> (i32, i32) {
    %c0_i32 = arith.constant 0 : i32
    %c0_i32_0 = arith.constant 0 : i32
    %c0_i32_1 = arith.constant 0 : i32
    return %c0_i32, %c0_i32_0 : i32, i32
  }
  func.func @transform_12(%arg0: i32) -> (i32, i32) {
    %c0_i32 = arith.constant 0 : i32
    %c0_i32_0 = arith.constant 0 : i32
    %c0_i32_1 = arith.constant 0 : i32
    return %c0_i32, %c0_i32_0 : i32, i32
  }
  func.func @transform_13(%arg0: i32) -> (i32, i32) {
    %c0_i32 = arith.constant 0 : i32
    %c0_i32_0 = arith.constant 0 : i32
    %c0_i32_1 = arith.constant 0 : i32
    return %c0_i32, %c0_i32_0 : i32, i32
  }
  func.func @transform_14(%arg0: i32) -> (i32, i32) {
    %c0_i32 = arith.constant 0 : i32
    %c0_i32_0 = arith.constant 0 : i32
    %c0_i32_1 = arith.constant 0 : i32
    return %c0_i32, %c0_i32_0 : i32, i32
  }
  func.func @transform_15(%arg0: i32) -> (i32, i32) {
    %c0_i32 = arith.constant 0 : i32
    %c0_i32_0 = arith.constant 0 : i32
    %c0_i32_1 = arith.constant 0 : i32
    return %c0_i32, %c0_i32_0 : i32, i32
  }
  func.func @transform_16(%arg0: i32) -> (i32, i32) {
    %c0_i32 = arith.constant 0 : i32
    %c0_i32_0 = arith.constant 0 : i32
    %c0_i32_1 = arith.constant 0 : i32
    return %c0_i32, %c0_i32_0 : i32, i32
  }
  func.func @transform_17(%arg0: i32) -> (i32, i32) {
    %c0_i32 = arith.constant 0 : i32
    %c0_i32_0 = arith.constant 0 : i32
    %c0_i32_1 = arith.constant 0 : i32
    return %c0_i32, %c0_i32_0 : i32, i32
  }
  func.func @transform_18(%arg0: i32) -> (i32, i32) {
    %c0_i32 = arith.constant 0 : i32
    %c0_i32_0 = arith.constant 0 : i32
    return %arg0, %c0_i32 : i32, i32
  }
  func.func @transform_19(%arg0: i32) -> (i32, i32) {
    %c0_i32 = arith.constant 0 : i32
    %c0_i32_0 = arith.constant 0 : i32
    return %arg0, %c0_i32 : i32, i32
  }
}

</mosaic_0001>

<bundles_post_ra>
// kernel: vae_forward.1
= control target key start
LH: loop header
LB: loop body
LE: loop exit
PB: predicated region body
PF: predicated region fallthrough
CT: control target
= control target key end

     0   :  { %s2239_s0 = inlined_call_operand.vmem [shape: f32[8,256], index: 0, kind: input, shape index: {}]   ;;  %s2240_s1 = inlined_call_operand.hbm [shape: f32[8,16], index: 1, kind: input, shape index: {}]   ;;  %s2241_s2 = inlined_call_operand.vmem [shape: f32[256,128], index: 2, kind: input, shape index: {}]   ;;  %s2242_s3 = inlined_call_operand.hbm [shape: f32[1,128], index: 3, kind: input, shape index: {}]   ;;  %s2243_s4 = inlined_call_operand.vmem [shape: f32[128,64], index: 4, kind: input, shape index: {}]   ;;  %s2244_s5 = inlined_call_operand.hbm [shape: f32[1,64], index: 5, kind: input, shape index: {}]   ;;  %s2245_s6 = inlined_call_operand.vmem [shape: f32[64,32], index: 6, kind: input, shape index: {}]   ;;  %s2246_s7 = inlined_call_operand.hbm [shape: f32[1,32], index: 7, kind: input, shape index: {}]   ;;  %s2247_s8 = inlined_call_operand.hbm [shape: f32[32,32], index: 8, kind: input, shape index: {}]   ;;  %s2248_s9 = inlined_call_operand.hbm [shape: f32[1,32], index: 9, kind: input, shape index: {}]   ;;  %s2249_s10 = inlined_call_operand.vmem [shape: f32[16,32], index: 10, kind: input, shape index: {}]   ;;  %s2250_s11 = inlined_call_operand.hbm [shape: f32[1,32], index: 11, kind: input, shape index: {}]   ;;  %s2251_s12 = inlined_call_operand.hbm [shape: f32[32,64], index: 12, kind: input, shape index: {}]   ;;  %s2252_s13 = inlined_call_operand.hbm [shape: f32[1,64], index: 13, kind: input, shape index: {}]   ;;  %s2253_s14 = inlined_call_operand.hbm [shape: f32[64,128], index: 14, kind: input, shape index: {}]   ;;  %s2254_s15 = inlined_call_operand.hbm [shape: f32[1,128], index: 15, kind: input, shape index: {}]   ;;  %s2255_s16 = inlined_call_operand.hbm [shape: f32[128,256], index: 16, kind: input, shape index: {}]   ;;  %s2256_s17 = inlined_call_operand.hbm [shape: f32[1,256], index: 17, kind: input, shape index: {}]   ;;  %s2257_s18 = inlined_call_operand.hbm [shape: f32[8,256], index: 18, kind: output, shape index: {0}]   ;;  %s2258_s19 = inlined_call_operand.vmem [shape: f32[8,32], index: 19, kind: output, shape index: {1}]  }
   0x1   :  { %2263 = sst [smem:[#allocation32_spill]] %s2239_s0 }
   0x2   :  { %2264 = sst [smem:[#allocation33_spill]] %s2240_s1 }
   0x3   :  { %2265 = sst [smem:[#allocation34_spill]] %s2241_s2 }
   0x4   :  { %2266 = sst [smem:[#allocation35_spill]] %s2242_s3 }
   0x5   :  { %25 = vsyncpa [#allocation3], 0 }
   0x6   :  { %26 = vsyncpa [#allocation6], 0 }
   0x7   :  { %27 = vsyncpa [#allocation9], 0 }
   0x8   :  { %28 = vsyncpa [#allocation12], 0 }
   0x9   :  { %29 = vsyncpa [#allocation15], 0 }
   0xa   :  { %30 = vsyncpa [#allocation18], 0 }
   0xb   :  { %31 = vsyncpa [#allocation21], 0 }
   0xc   :  { %32 = vsyncpa [#allocation4], 0  ;;  %s1718_s0 = smov [#allocation5]   ;;  %s1719_s20 = smov [#allocation8]  }
   0xd   :  { %s53_s30 = sshll.u32 %s1718_s0, 4  ;;  %s77_s21 = sshll.u32 %s1719_s20, 4  ;;  %s54_s30 = int_to_ptr.vmem [resolvable:$true] %s53_s30  ;;  %s78_s21 = int_to_ptr.vmem [resolvable:$true] %s77_s21 }
   0xe   :  { %s2267_s2 = sld [smem:[#allocation35_spill]] }
  0x14   :  { %s1394_s23 = scalar_lea.hbm %s2267_s2, 16 }
  0x15   :  { %p1395_p0 = scmp.ne.s32.totalorder %s2267_s2, %s1394_s23  ;;  %p1398_p1 = scmp.lt.u32.totalorder %s1394_s23, %s2267_s2 }
  0x17   :  { %p1400_p2 = pnand %p1398_p1, %p1395_p0 }
  0x19   :  { %1403 = shalt.err (!%p1400_p2)
}
  0x1a   :  { %s1404_s27 = scalar_lea.vmem %s54_s30, 16  ;;  %s1408_s28 = scalar_lea.vmem %s54_s30, 32 }
  0x1b   :  { %p1405_p3 = scmp.ne.s32.totalorder %s54_s30, %s1404_s27  ;;  %p1409_p4 = scmp.lt.s32.totalorder %s54_s30, %s54_s30 }
  0x1c   :  { %p1410_p5 = scmp.lt.s32.totalorder %s1408_s28, %s1404_s27 }
  0x1e   :  { %p1411_p6 = por %p1410_p5, %p1409_p4 }
  0x20   :  { %p1412_p7 = pnand %p1411_p6, %p1405_p3 }
  0x22   :  { %1415 = shalt.err (!%p1412_p7)
}
  0x23   :  { %56 = dma.hbm_to_vmem [thread:$0]  %s2267_s2, 16, %s54_s30, [#allocation6]  }
  0x24   :  { %s1416_s22 = scalar_lea.hbm %s2246_s7, 16 }
  0x25   :  { %p1417_p8 = scmp.ne.s32.totalorder %s2246_s7, %s1416_s22  ;;  %p1420_p9 = scmp.lt.u32.totalorder %s1416_s22, %s2246_s7 }
  0x27   :  { %p1422_p10 = pnand %p1420_p9, %p1417_p8 }
  0x29   :  { %1425 = shalt.err (!%p1422_p10)
}
  0x2a   :  { %s1426_s26 = scalar_lea.vmem %s78_s21, 16  ;;  %s1430_s27 = scalar_lea.vmem %s78_s21, 32 }
  0x2b   :  { %p1427_p11 = scmp.ne.s32.totalorder %s78_s21, %s1426_s26  ;;  %p1431_p12 = scmp.lt.s32.totalorder %s78_s21, %s78_s21 }
  0x2c   :  { %p1432_p13 = scmp.lt.s32.totalorder %s1430_s27, %s1426_s26 }
  0x2e   :  { %p1433_p0 = por %p1432_p13, %p1431_p12 }
  0x30   :  { %p1434_p1 = pnand %p1433_p0, %p1427_p11 }
  0x32   :  { %1437 = shalt.err (!%p1434_p1)
}
  0x33   :  { %80 = dma.hbm_to_vmem [thread:$0]  %s2246_s7, 16, %s78_s21, [#allocation9]  }
  0x34   :  { %s1720_s28 = smov [#allocation11]   ;;  %s1438_s1 = scalar_lea.hbm %s2248_s9, 16 }
  0x35   :  { %s99_s29 = sshll.u32 %s1720_s28, 4  ;;  %p1439_p2 = scmp.ne.s32.totalorder %s2248_s9, %s1438_s1  ;;  %s100_s29 = int_to_ptr.vmem [resolvable:$true] %s99_s29 }
  0x36   :  { %p1442_p3 = scmp.lt.u32.totalorder %s1438_s1, %s2248_s9 }
  0x38   :  { %p1444_p4 = pnand %p1442_p3, %p1439_p2 }
  0x3a   :  { %1447 = shalt.err (!%p1444_p4)
}
  0x3b   :  { %s1448_s3 = scalar_lea.vmem %s100_s29, 16  ;;  %s1452_s7 = scalar_lea.vmem %s100_s29, 32 }
  0x3c   :  { %p1449_p5 = scmp.ne.s32.totalorder %s100_s29, %s1448_s3  ;;  %p1453_p6 = scmp.lt.s32.totalorder %s100_s29, %s100_s29 }
  0x3d   :  { %p1454_p7 = scmp.lt.s32.totalorder %s1452_s7, %s1448_s3 }
  0x3f   :  { %p1455_p8 = por %p1454_p7, %p1453_p6 }
  0x41   :  { %p1456_p9 = pnand %p1455_p8, %p1449_p5 }
  0x43   :  { %1459 = shalt.err (!%p1456_p9)
}
  0x44   :  { %102 = dma.hbm_to_vmem [thread:$0]  %s2248_s9, 16, %s100_s29, [#allocation12]  }
  0x45   :  { %s1721_s27 = smov [#allocation14]   ;;  %s1722_s2 = smov [#allocation17]  }
  0x46   :  { %s120_s30 = sshll.u32 %s1721_s27, 4  ;;  %s142_s28 = sshll.u32 %s1722_s2, 4  ;;  %s121_s30 = int_to_ptr.vmem [resolvable:$true] %s120_s30  ;;  %s143_s28 = int_to_ptr.vmem [resolvable:$true] %s142_s28 }
  0x47   :  { %s1460_s1 = scalar_lea.hbm %s2251_s12, 512 }
  0x48   :  { %p1461_p10 = scmp.ne.s32.totalorder %s2251_s12, %s1460_s1  ;;  %p1464_p11 = scmp.lt.u32.totalorder %s1460_s1, %s2251_s12 }
  0x4a   :  { %p1466_p12 = pnand %p1464_p11, %p1461_p10 }
  0x4c   :  { %1469 = shalt.err (!%p1466_p12)
}
  0x4d   :  { %s1470_s9 = scalar_lea.vmem %s121_s30, 512  ;;  %p1475_p0 = scmp.lt.s32.totalorder %s121_s30, %s121_s30 }
  0x4e   :  { %p1471_p13 = scmp.ne.s32.totalorder %s121_s30, %s1470_s9  ;;  %p1476_p1 = scmp.lt.s32.totalorder %s1470_s9, %s1470_s9 }
  0x50   :  { %p1477_p2 = por %p1476_p1, %p1475_p0 }
  0x52   :  { %p1478_p3 = pnand %p1477_p2, %p1471_p13 }
  0x54   :  { %1481 = shalt.err (!%p1478_p3)
}
  0x55   :  { %s1723_s29 = smov 128   ;;  %s1724_s3 = smov 8  }
  0x56   :  { %126 = dma.hbm_to_vmem [thread:$0]  %s2251_s12, 512, %s121_s30, [#allocation15], %s1723_s29, %s1723_s29, %s1724_s3  }
  0x57   :  { %s1482_s2 = scalar_lea.hbm %s2253_s14, 1024 }
  0x58   :  { %p1483_p4 = scmp.ne.s32.totalorder %s2253_s14, %s1482_s2  ;;  %p1486_p5 = scmp.lt.u32.totalorder %s1482_s2, %s2253_s14 }
  0x5a   :  { %p1488_p6 = pnand %p1486_p5, %p1483_p4 }
  0x5c   :  { %1491 = shalt.err (!%p1488_p6)
}
  0x5d   :  { %s1492_s24 = scalar_lea.vmem %s143_s28, 1024  ;;  %p1497_p8 = scmp.lt.s32.totalorder %s143_s28, %s143_s28 }
  0x5e   :  { %p1493_p7 = scmp.ne.s32.totalorder %s143_s28, %s1492_s24  ;;  %p1498_p9 = scmp.lt.s32.totalorder %s1492_s24, %s1492_s24 }
  0x60   :  { %p1499_p10 = por %p1498_p9, %p1497_p8 }
  0x62   :  { %p1500_p11 = pnand %p1499_p10, %p1493_p7 }
  0x64   :  { %1503 = shalt.err (!%p1500_p11)
}
  0x65   :  { %148 = dma.hbm_to_vmem [thread:$0]  %s2253_s14, 1024, %s143_s28, [#allocation18], %s1723_s29, %s1723_s29, %s1724_s3  }
  0x66   :  { %s1725_s23 = smov [#allocation20]   ;;  %s1504_s21 = scalar_lea.hbm %s2255_s16, 4096 }
  0x67   :  { %s164_s25 = sshll.u32 %s1725_s23, 4  ;;  %p1505_p12 = scmp.ne.s32.totalorder %s2255_s16, %s1504_s21  ;;  %s165_s25 = int_to_ptr.vmem [resolvable:$true] %s164_s25 }
  0x68   :  { %p1508_p13 = scmp.lt.u32.totalorder %s1504_s21, %s2255_s16 }
  0x6a   :  { %p1510_p0 = pnand %p1508_p13, %p1505_p12 }
  0x6c   :  { %1513 = shalt.err (!%p1510_p0)
}
  0x6d   :  { %s1514_s20 = scalar_lea.vmem %s165_s25, 4096  ;;  %p1519_p2 = scmp.lt.s32.totalorder %s165_s25, %s165_s25 }
  0x6e   :  { %p1515_p1 = scmp.ne.s32.totalorder %s165_s25, %s1514_s20  ;;  %p1520_p3 = scmp.lt.s32.totalorder %s1514_s20, %s1514_s20 }
  0x70   :  { %p1521_p4 = por %p1520_p3, %p1519_p2 }
  0x72   :  { %p1522_p5 = pnand %p1521_p4, %p1515_p1 }
  0x74   :  { %1525 = shalt.err (!%p1522_p5)
}
  0x75   :  { %s1726_s14 = smov 256   ;;  %s1727_s28 = smov 16  }
  0x76   :  { %170 = dma.hbm_to_vmem [thread:$0]  %s2255_s16, 4096, %s165_s25, [#allocation21], %s1726_s14, %s1726_s14, %s1727_s28  }
  0x77   :  { %s1728_s24 = smov [#allocation2]   ;;  %s1729_s30 = smov [#allocation7]  }
  0x78   :  { %s41_s12 = sshll.u32 %s1728_s24, 4  ;;  %s65_s23 = sshll.u32 %s1729_s30, 4  ;;  %s42_s12 = int_to_ptr.vmem [resolvable:$true] %s41_s12  ;;  %s66_s23 = int_to_ptr.vmem [resolvable:$true] %s65_s23 }
  0x79   :  { %s2268_s21 = sld [smem:[#allocation33_spill]] }
  0x7f   :  { %s1526_s26 = scalar_lea.hbm %s2268_s21, 128 }
  0x80   :  { %p1527_p6 = scmp.ne.s32.totalorder %s2268_s21, %s1526_s26  ;;  %p1530_p7 = scmp.lt.u32.totalorder %s1526_s26, %s2268_s21 }
  0x82   :  { %p1532_p8 = pnand %p1530_p7, %p1527_p6 }
  0x84   :  { %1535 = shalt.err (!%p1532_p8)
}
  0x85   :  { %s1536_s16 = scalar_lea.vmem %s42_s12, 128  ;;  %p1541_p10 = scmp.lt.s32.totalorder %s42_s12, %s42_s12 }
  0x86   :  { %p1537_p9 = scmp.ne.s32.totalorder %s42_s12, %s1536_s16  ;;  %p1542_p11 = scmp.lt.s32.totalorder %s1536_s16, %s1536_s16 }
  0x88   :  { %p1543_p12 = por %p1542_p11, %p1541_p10 }
  0x8a   :  { %p1544_p13 = pnand %p1543_p12, %p1537_p9 }
  0x8c   :  { %1547 = shalt.err (!%p1544_p13)
}
  0x8d   :  { %44 = dma.hbm_to_vmem [thread:$0]  %s2268_s21, 128, %s42_s12, [#allocation3]  }
  0x8e   :  { %s1548_s22 = scalar_lea.hbm %s2244_s5, 16 }
  0x8f   :  { %p1549_p0 = scmp.ne.s32.totalorder %s2244_s5, %s1548_s22  ;;  %p1552_p1 = scmp.lt.u32.totalorder %s1548_s22, %s2244_s5 }
  0x91   :  { %p1554_p2 = pnand %p1552_p1, %p1549_p0 }
  0x93   :  { %1557 = shalt.err (!%p1554_p2)
}
  0x94   :  { %s1558_s26 = scalar_lea.vmem %s66_s23, 16  ;;  %s1562_s27 = scalar_lea.vmem %s66_s23, 32 }
  0x95   :  { %p1559_p3 = scmp.ne.s32.totalorder %s66_s23, %s1558_s26  ;;  %p1563_p4 = scmp.lt.s32.totalorder %s66_s23, %s66_s23 }
  0x96   :  { %p1564_p5 = scmp.lt.s32.totalorder %s1562_s27, %s1558_s26 }
  0x98   :  { %p1565_p6 = por %p1564_p5, %p1563_p4 }
  0x9a   :  { %p1566_p7 = pnand %p1565_p6, %p1559_p3 }
  0x9c   :  { %1569 = shalt.err (!%p1566_p7)
}
  0x9d   :  { %68 = dma.hbm_to_vmem [thread:$0]  %s2244_s5, 16, %s66_s23, [#allocation6]  }
  0x9e   :  { %s1730_s2 = smov [#allocation10]   ;;  %s1731_s20 = smov [#allocation13]  }
  0x9f   :  { %s86_s0 = sshll.u32 %s1730_s2, 4  ;;  %s111_s16 = sshll.u32 %s1731_s20, 4  ;;  %s87_s0 = int_to_ptr.vmem [resolvable:$true] %s86_s0  ;;  %s112_s16 = int_to_ptr.vmem [resolvable:$true] %s111_s16 }
  0xa0   :  { %s1570_s28 = scalar_lea.hbm %s2247_s8, 512 }
  0xa1   :  { %p1571_p8 = scmp.ne.s32.totalorder %s2247_s8, %s1570_s28  ;;  %p1574_p9 = scmp.lt.u32.totalorder %s1570_s28, %s2247_s8 }
  0xa3   :  { %p1576_p10 = pnand %p1574_p9, %p1571_p8 }
  0xa5   :  { %1579 = shalt.err (!%p1576_p10)
}
  0xa6   :  { %s1580_s5 = scalar_lea.vmem %s87_s0, 512  ;;  %p1585_p12 = scmp.lt.s32.totalorder %s87_s0, %s87_s0 }
  0xa7   :  { %p1581_p11 = scmp.ne.s32.totalorder %s87_s0, %s1580_s5  ;;  %p1586_p13 = scmp.lt.s32.totalorder %s1580_s5, %s1580_s5 }
  0xa9   :  { %p1587_p0 = por %p1586_p13, %p1585_p12 }
  0xab   :  { %p1588_p1 = pnand %p1587_p0, %p1581_p11 }
  0xad   :  { %1591 = shalt.err (!%p1588_p1)
}
  0xae   :  { %92 = dma.hbm_to_vmem [thread:$0]  %s2247_s8, 512, %s87_s0, [#allocation9], %s1723_s29, %s1723_s29, %s1724_s3  }
  0xaf   :  { %s1592_s27 = scalar_lea.hbm %s2250_s11, 16 }
  0xb0   :  { %p1593_p2 = scmp.ne.s32.totalorder %s2250_s11, %s1592_s27  ;;  %p1596_p3 = scmp.lt.u32.totalorder %s1592_s27, %s2250_s11 }
  0xb2   :  { %p1598_p4 = pnand %p1596_p3, %p1593_p2 }
  0xb4   :  { %1601 = shalt.err (!%p1598_p4)
}
  0xb5   :  { %s1602_s25 = scalar_lea.vmem %s112_s16, 16  ;;  %s1606_s14 = scalar_lea.vmem %s112_s16, 32 }
  0xb6   :  { %p1603_p5 = scmp.ne.s32.totalorder %s112_s16, %s1602_s25  ;;  %p1607_p6 = scmp.lt.s32.totalorder %s112_s16, %s112_s16 }
  0xb7   :  { %p1608_p7 = scmp.lt.s32.totalorder %s1606_s14, %s1602_s25 }
  0xb9   :  { %p1609_p8 = por %p1608_p7, %p1607_p6 }
  0xbb   :  { %p1610_p9 = pnand %p1609_p8, %p1603_p5 }
  0xbd   :  { %1613 = shalt.err (!%p1610_p9)
}
  0xbe   :  { %114 = dma.hbm_to_vmem [thread:$0]  %s2250_s11, 16, %s112_s16, [#allocation12]  }
  0xbf   :  { %s1732_s3 = smov [#allocation16]   ;;  %s1733_s28 = smov [#allocation19]  }
  0xc0   :  { %s133_s0 = sshll.u32 %s1732_s3, 4  ;;  %s155_s1 = sshll.u32 %s1733_s28, 4  ;;  %s134_s0 = int_to_ptr.vmem [resolvable:$true] %s133_s0  ;;  %s156_s1 = int_to_ptr.vmem [resolvable:$true] %s155_s1 }
  0xc1   :  { %s1614_s30 = scalar_lea.hbm %s2252_s13, 16 }
  0xc2   :  { %p1615_p10 = scmp.ne.s32.totalorder %s2252_s13, %s1614_s30  ;;  %p1618_p11 = scmp.lt.u32.totalorder %s1614_s30, %s2252_s13 }
  0xc4   :  { %p1620_p12 = pnand %p1618_p11, %p1615_p10 }
  0xc6   :  { %1623 = shalt.err (!%p1620_p12)
}
  0xc7   :  { %s1624_s11 = scalar_lea.vmem %s134_s0, 16  ;;  %s1628_s16 = scalar_lea.vmem %s134_s0, 32 }
  0xc8   :  { %p1625_p13 = scmp.ne.s32.totalorder %s134_s0, %s1624_s11  ;;  %p1629_p0 = scmp.lt.s32.totalorder %s134_s0, %s134_s0 }
  0xc9   :  { %p1630_p1 = scmp.lt.s32.totalorder %s1628_s16, %s1624_s11 }
  0xcb   :  { %p1631_p2 = por %p1630_p1, %p1629_p0 }
  0xcd   :  { %p1632_p3 = pnand %p1631_p2, %p1625_p13 }
  0xcf   :  { %1635 = shalt.err (!%p1632_p3)
}
  0xd0   :  { %136 = dma.hbm_to_vmem [thread:$0]  %s2252_s13, 16, %s134_s0, [#allocation15]  }
  0xd1   :  { %s1636_s2 = scalar_lea.hbm %s2254_s15, 16 }
  0xd2   :  { %p1637_p4 = scmp.ne.s32.totalorder %s2254_s15, %s1636_s2  ;;  %p1640_p5 = scmp.lt.u32.totalorder %s1636_s2, %s2254_s15 }
  0xd4   :  { %p1642_p6 = pnand %p1640_p5, %p1637_p4 }
  0xd6   :  { %1645 = shalt.err (!%p1642_p6)
}
  0xd7   :  { %s1646_s29 = scalar_lea.vmem %s156_s1, 16  ;;  %s1650_s3 = scalar_lea.vmem %s156_s1, 32 }
  0xd8   :  { %p1647_p7 = scmp.ne.s32.totalorder %s156_s1, %s1646_s29  ;;  %p1651_p8 = scmp.lt.s32.totalorder %s156_s1, %s156_s1 }
  0xd9   :  { %p1652_p9 = scmp.lt.s32.totalorder %s1650_s3, %s1646_s29 }
  0xdb   :  { %p1653_p10 = por %p1652_p9, %p1651_p8 }
  0xdd   :  { %p1654_p11 = pnand %p1653_p10, %p1647_p7 }
  0xdf   :  { %1657 = shalt.err (!%p1654_p11)
}
  0xe0   :  { %158 = dma.hbm_to_vmem [thread:$0]  %s2254_s15, 16, %s156_s1, [#allocation18]  }
  0xe1   :  { %s1734_s28 = smov [#allocation22]   ;;  %s1658_s5 = scalar_lea.hbm %s2256_s17, 32 }
  0xe2   :  { %s177_s22 = sshll.u32 %s1734_s28, 4  ;;  %p1659_p12 = scmp.ne.s32.totalorder %s2256_s17, %s1658_s5  ;;  %s178_s22 = int_to_ptr.vmem [resolvable:$true] %s177_s22 }
  0xe3   :  { %p1662_p13 = scmp.lt.u32.totalorder %s1658_s5, %s2256_s17 }
  0xe5   :  { %p1664_p0 = pnand %p1662_p13, %p1659_p12 }
  0xe7   :  { %1667 = shalt.err (!%p1664_p0)
}
  0xe8   :  { %s1668_s16 = scalar_lea.vmem %s178_s22, 32  ;;  %p1673_p2 = scmp.lt.s32.totalorder %s178_s22, %s178_s22 }
  0xe9   :  { %p1669_p1 = scmp.ne.s32.totalorder %s178_s22, %s1668_s16  ;;  %p1674_p3 = scmp.lt.s32.totalorder %s1668_s16, %s1668_s16 }
  0xeb   :  { %p1675_p4 = por %p1674_p3, %p1673_p2 }
  0xed   :  { %p1676_p5 = pnand %p1675_p4, %p1669_p1 }
  0xef   :  { %1679 = shalt.err (!%p1676_p5)
}
  0xf0   :  { %180 = dma.hbm_to_vmem [thread:$0]  %s2256_s17, 32, %s178_s22, [#allocation21]  }
  0xf1   :  { %1702 = dma.done.wait [#allocation3], 128  }
  0xf2   :  { %1703 = vsyncadd [#allocation3], 4294967168 }
  0xf3   :  { %1704 = dma.done.wait [#allocation6], 32  }
  0xf4   :  { %1705 = vsyncadd [#allocation6], 4294967264 }
  0xf5   :  { %1706 = dma.done.wait [#allocation9], 528  }
  0xf6   :  { %1707 = vsyncadd [#allocation9], 4294966768 }
  0xf7   :  { %1708 = dma.done.wait [#allocation12], 32  }
  0xf8   :  { %1709 = vsyncadd [#allocation12], 4294967264 }
  0xf9   :  { %1710 = dma.done.wait [#allocation15], 528  }
  0xfa   :  { %1711 = vsyncadd [#allocation15], 4294966768 }
  0xfb   :  { %1712 = dma.done.wait [#allocation18], 1040  }
  0xfc   :  { %1713 = vsyncadd [#allocation18], 4294966256 }
  0xfd   :  { %1714 = dma.done.wait [#allocation21], 4128  }
  0xfe   :  { %1715 = vsyncadd [#allocation21], 4294963168  ;;  %v1735_v0 = vmov 0.0|0.0   ;;  %s2269_s17 = sld [smem:[#allocation34_spill]]  ;;  %s2270_s28 = sld [smem:[#allocation32_spill]]  ;;  %v334_v27 = vld [vmem:[%s2243_s4] sm:$0xff] }
  0xff   :  { %1267 = vmatprep.subr.bf16.mxu1 %v1735_v0  ;;  %v335_v28 = vld [vmem:[%s2243_s4 + $0x8] sm:$0xff]  ;;  %v336_v31 = vld [vmem:[%s2243_s4 + $0x10] sm:$0xff]  ;;  %v337_v32 = vld [vmem:[%s2243_s4 + $0x18] sm:$0xff]  ;;  %vm1736_vm0 = vmmov 0   ;;  %vm445_vm3 = vcmask 523264   ;;  %vm533_vm5 = vcmask 261120  }
 0x100   :  { %v1268_v30 = vpack.c.bf16 %v335_v28, %v334_v27  ;;  %v1271_v38 = vpack.c.bf16 %v337_v32, %v336_v31  ;;  %v338_v39 = vld [vmem:[%s2243_s4 + $0x20] sm:$0xff]  ;;  %v339_v40 = vld [vmem:[%s2243_s4 + $0x28] sm:$0xff]  ;;  %v340_v48 = vld [vmem:[%s2243_s4 + $0x30] sm:$0xff]  ;;  %s1738_s11 = smov 112   ;;  %vm627_vm6 = vcmask 130048  }
 0x101   :  { %v1274_v47 = vpack.c.bf16 %v339_v40, %v338_v39  ;;  %v341_v49 = vld [vmem:[%s2243_s4 + $0x38] sm:$0xff]  ;;  %v342_v57 = vld [vmem:[%s2243_s4 + $0x40] sm:$0xff]  ;;  %v343_v58 = vld [vmem:[%s2243_s4 + $0x48] sm:$0xff] }
 0x102   :  { %1269 = vmatpush3.bf16.msra.mxu1 %v1268_v30  ;;  %v1277_v56 = vpack.c.bf16 %v341_v49, %v340_v48  ;;  %v1280_v63 = vpack.c.bf16 %v343_v58, %v342_v57  ;;  %v437_v30 = vld [vmem:[%s2245_s6 + $0x38] sm:$0xff]  ;;  %v1037_v32 = vld [vmem:[#allocation7] ss:$0 sm:$0xff] }
 0x103   :  { %1270 = vmatprep.subr.bf16.mxu1 %v1735_v0 }
 0x104   :  { %v238_v1 = vld [vmem:[%s2269_s17 + $0x80] sm:$0xff]  ;;  %v239_v2 = vld [vmem:[%s2269_s17 + $0x88] sm:$0xff]  ;;  %v240_v6 = vld [vmem:[%s2269_s17 + $0x90] sm:$0xff] }
 0x105   :  { %v222_v3 = vld [vmem:[%s2269_s17] sm:$0xff]  ;;  %v1235_v4 = vpack.c.bf16 %v239_v2, %v238_v1  ;;  %v223_v5 = vld [vmem:[%s2269_s17 + $0x8] sm:$0xff]  ;;  %v241_v7 = vld [vmem:[%s2269_s17 + $0x98] sm:$0xff] }
 0x106   :  { %v1237_v8 = vpack.c.bf16 %v223_v5, %v222_v3  ;;  %v1239_v9 = vpack.c.bf16 %v241_v7, %v240_v6  ;;  %v224_v10 = vld [vmem:[%s2269_s17 + $0x10] sm:$0xff]  ;;  %v225_v11 = vld [vmem:[%s2269_s17 + $0x18] sm:$0xff]  ;;  %v242_v12 = vld [vmem:[%s2269_s17 + $0xa0] sm:$0xff]  ;;  %1272 = vmatpush3.bf16.msra.mxu1 %v1271_v38 }
 0x107   :  { %1236 = vmatprep.subr.bf16.mxu0 %v1235_v4  ;;  %v243_v13 = vld [vmem:[%s2269_s17 + $0xa8] sm:$0xff]  ;;  %v1241_v14 = vpack.c.bf16 %v225_v11, %v224_v10  ;;  %v226_v16 = vld [vmem:[%s2269_s17 + $0x20] sm:$0xff]  ;;  %v244_v18 = vld [vmem:[%s2269_s17 + $0xb0] sm:$0xff]  ;;  %1273 = vmatprep.subr.bf16.mxu1 %v1735_v0 }
 0x108   :  { %1238 = vmatpush3.bf16.msra.mxu0 %v1237_v8  ;;  %v1243_v15 = vpack.c.bf16 %v243_v13, %v242_v12  ;;  %v227_v17 = vld [vmem:[%s2269_s17 + $0x28] sm:$0xff]  ;;  %v245_v19 = vld [vmem:[%s2269_s17 + $0xb8] sm:$0xff]  ;;  %v228_v22 = vld [vmem:[%s2269_s17 + $0x30] sm:$0xff]  ;;  %v1737_v12 = vmov 0.0  }
 0x109   :  { %1240 = vmatprep.subr.bf16.mxu0 %v1239_v9  ;;  %v1245_v20 = vpack.c.bf16 %v227_v17, %v226_v16  ;;  %v1247_v21 = vpack.c.bf16 %v245_v19, %v244_v18  ;;  %v229_v23 = vld [vmem:[%s2269_s17 + $0x38] sm:$0xff]  ;;  %v246_v24 = vld [vmem:[%s2269_s17 + $0xc0] sm:$0xff]  ;;  %v247_v25 = vld [vmem:[%s2269_s17 + $0xc8] sm:$0xff]  ;;  %1165 = vmatprep.mubr.msk.f32.mxu1 %vm1736_vm0, %v1737_v12 }
 0x10a   :  { %v221_v26 = vld [vmem:[%s2270_s28 + $0x8] sm:$0xff]  ;;  %v1249_v29 = vpack.c.bf16 %v229_v23, %v228_v22  ;;  %v1251_v33 = vpack.c.bf16 %v247_v25, %v246_v24  ;;  %v230_v34 = vld [vmem:[%s2269_s17 + $0x40] sm:$0xff]  ;;  %v248_v36 = vld [vmem:[%s2269_s17 + $0xd0] sm:$0xff]  ;;  %1275 = vmatpush3.bf16.msra.mxu1 %v1274_v47 }
 0x10b   :  { %325 = vmatprep.mubr.f32.mxu0 %v221_v26  ;;  %v231_v35 = vld [vmem:[%s2269_s17 + $0x48] sm:$0xff]  ;;  %v249_v37 = vld [vmem:[%s2269_s17 + $0xd8] sm:$0xff]  ;;  %v232_v43 = vld [vmem:[%s2269_s17 + $0x50] sm:$0xff]  ;;  %1276 = vmatprep.subr.bf16.mxu1 %v1735_v0 }
 0x10c   :  { %1242 = vmatpush3.bf16.msra.mxu0 %v1241_v14  ;;  %v1253_v41 = vpack.c.bf16 %v231_v35, %v230_v34  ;;  %v1255_v42 = vpack.c.bf16 %v249_v37, %v248_v36  ;;  %v233_v44 = vld [vmem:[%s2269_s17 + $0x58] sm:$0xff]  ;;  %v250_v45 = vld [vmem:[%s2269_s17 + $0xe0] sm:$0xff]  ;;  %v251_v46 = vld [vmem:[%s2269_s17 + $0xe8] sm:$0xff] }
 0x10d   :  { %1244 = vmatprep.subr.bf16.mxu0 %v1243_v15  ;;  %v1257_v50 = vpack.c.bf16 %v233_v44, %v232_v43  ;;  %v1259_v51 = vpack.c.bf16 %v251_v46, %v250_v45  ;;  %v234_v52 = vld [vmem:[%s2269_s17 + $0x60] sm:$0xff]  ;;  %v235_v53 = vld [vmem:[%s2269_s17 + $0x68] sm:$0xff]  ;;  %v252_v54 = vld [vmem:[%s2269_s17 + $0xf0] sm:$0xff] }
 0x10e   :  { %v253_v55 = vld [vmem:[%s2269_s17 + $0xf8] sm:$0xff]  ;;  %v1261_v59 = vpack.c.bf16 %v235_v53, %v234_v52  ;;  %v236_v61 = vld [vmem:[%s2269_s17 + $0x70] sm:$0xff]  ;;  %1278 = vmatpush3.bf16.msra.mxu1 %v1277_v56  ;;  %v220_v5 = vld [vmem:[%s2270_s28] sm:$0xff] }
 0x10f   :  { %v1263_v60 = vpack.c.bf16 %v253_v55, %v252_v54  ;;  %v237_v62 = vld [vmem:[%s2269_s17 + $0x78] sm:$0xff]  ;;  %1279 = vmatprep.subr.bf16.mxu1 %v1735_v0  ;;  %v344_v1 = vld [vmem:[%s2243_s4 + $0x50] sm:$0xff]  ;;  %v346_v6 = vld [vmem:[%s2243_s4 + $0x60] sm:$0xff] }
 0x110   :  { %1246 = vmatpush3.bf16.msra.mxu0 %v1245_v20  ;;  %v345_v2 = vld [vmem:[%s2243_s4 + $0x58] sm:$0xff]  ;;  %v1265_v3 = vpack.c.bf16 %v237_v62, %v236_v61  ;;  %v347_v7 = vld [vmem:[%s2243_s4 + $0x68] sm:$0xff]  ;;  %v348_v9 = vld [vmem:[%s2243_s4 + $0x70] sm:$0xff] }
 0x111   :  { %1248 = vmatprep.subr.bf16.mxu0 %v1247_v21  ;;  %v1283_v4 = vpack.c.bf16 %v345_v2, %v344_v1  ;;  %v1286_v8 = vpack.c.bf16 %v347_v7, %v346_v6  ;;  %v349_v10 = vld [vmem:[%s2243_s4 + $0x78] sm:$0xff]  ;;  %v430_v13 = vld [vmem:[%s2245_s6] sm:$0xff]  ;;  %v431_v14 = vld [vmem:[%s2245_s6 + $0x8] sm:$0xff] }
 0x112   :  { %1281 = vmatpush3.bf16.msra.mxu1 %v1280_v63  ;;  %v1289_v11 = vpack.c.bf16 %v349_v10, %v348_v9  ;;  %v432_v15 = vld [vmem:[%s2245_s6 + $0x10] sm:$0xff]  ;;  %v1292_v16 = vpack.c.bf16 %v431_v14, %v430_v13  ;;  %v433_v17 = vld [vmem:[%s2245_s6 + $0x18] sm:$0xff]  ;;  %v434_v19 = vld [vmem:[%s2245_s6 + $0x20] sm:$0xff] }
 0x113   :  { %1282 = vmatprep.subr.bf16.mxu1 %v1735_v0  ;;  %v1295_v18 = vpack.c.bf16 %v433_v17, %v432_v15  ;;  %v435_v20 = vld [vmem:[%s2245_s6 + $0x28] sm:$0xff]  ;;  %v523_v35 = vld [vmem:[#allocation10 + $0x8] sm:$0xff]  ;;  %v618_v55 = vld [vmem:[%s2249_s10] sm:$0xff] }
 0x114   :  { %1250 = vmatpush3.bf16.msra.mxu0 %v1249_v29  ;;  %v1298_v21 = vpack.c.bf16 %v435_v20, %v434_v19  ;;  %v1036_v23 = vld [vmem:[#allocation5] ss:$0 sm:$0xff]  ;;  %v436_v29 = vld [vmem:[%s2245_s6 + $0x30] sm:$0xff]  ;;  %v1038_v44 = vld [vmem:[#allocation8] ss:$0 sm:$0xff] }
 0x115   :  { %1252 = vmatprep.subr.bf16.mxu0 %v1251_v33  ;;  %v1301_v31 = vpack.c.bf16 %v437_v30, %v436_v29  ;;  %v522_v34 = vld [vmem:[#allocation10] sm:$0xff]  ;;  %v705_v62 = vld [vmem:[#allocation14 + $0x8] sm:$0xff]  ;;  %v793_v9 = vld [vmem:[#allocation17 + $0x10] sm:$0xff] }
 0x116   :  { %1284 = vmatpush3.bf16.msra.mxu1 %v1283_v4  ;;  %v1304_v39 = vpack.c.bf16 %v523_v35, %v522_v34  ;;  %v619_v56 = vld [vmem:[%s2249_s10 + $0x8] sm:$0xff]  ;;  %v704_v61 = vld [vmem:[#allocation14] sm:$0xff]  ;;  %v796_v15 = vld [vmem:[#allocation17 + $0x28] sm:$0xff]  ;;  %s1739_s10 = smov [#allocation23]  }
 0x117   :  { %1285 = vmatprep.subr.bf16.mxu1 %v1735_v0  ;;  %v1310_v57 = vpack.c.bf16 %v619_v56, %v618_v55  ;;  %v1313_v2 = vpack.c.bf16 %v705_v62, %v704_v61  ;;  %v706_v4 = vld [vmem:[#allocation14 + $0x10] sm:$0xff]  ;;  %v791_v7 = vld [vmem:[#allocation17] sm:$0xff]  ;;  %v1042_v17 = vld [vmem:[#allocation13] ss:$0 sm:$0xff] }
 0x118   :  { %1254 = vmatpush3.bf16.msra.mxu0 %v1253_v41  ;;  %v524_v41 = vld [vmem:[#allocation10 + $0x10] sm:$0xff]  ;;  %v795_v14 = vld [vmem:[#allocation17 + $0x20] sm:$0xff]  ;;  %v888_v35 = vld [vmem:[#allocation20 + $0x30] sm:$0xff] }
 0x119   :  { %1256 = vmatprep.subr.bf16.mxu0 %v1255_v42  ;;  %v525_v42 = vld [vmem:[#allocation10 + $0x18] sm:$0xff]  ;;  %v887_v30 = vld [vmem:[#allocation20 + $0x28] sm:$0xff]  ;;  %v886_v34 = vld [vmem:[#allocation20 + $0x20] sm:$0xff] }
 0x11a   :  { %1287 = vmatpush3.bf16.msra.mxu1 %v1286_v8  ;;  %v1307_v43 = vpack.c.bf16 %v525_v42, %v524_v41  ;;  %v792_v8 = vld [vmem:[#allocation17 + $0x8] sm:$0xff]  ;;  %v897_v42 = vld [vmem:[#allocation20 + $0x78] sm:$0xff] }
 0x11b   :  { %1288 = vmatprep.subr.bf16.mxu1 %v1735_v0  ;;  %v1319_v10 = vpack.c.bf16 %v792_v8, %v791_v7  ;;  %v895_v41 = vld [vmem:[#allocation20 + $0x68] sm:$0xff] }
 0x11c   :  { %1258 = vmatpush3.bf16.msra.mxu0 %v1257_v50  ;;  %v1040_v50 = vld [vmem:[#allocation11] ss:$0 sm:$0xff] }
 0x11d   :  { %1260 = vmatprep.subr.bf16.mxu0 %v1259_v51 }
 0x11e   :  { %1290 = vmatpush3.bf16.msra.mxu1 %v1289_v11  ;;  %v794_v11 = vld [vmem:[#allocation17 + $0x18] sm:$0xff] }
 0x11f   :  { %1309 = vmatprep.subr.bf16.mxu1 %v1735_v0  ;;  %v1322_v13 = vpack.c.bf16 %v794_v11, %v793_v9  ;;  %v911_v9 = vld [vmem:[#allocation20 + $0xe8] sm:$0xff] }
 0x120   :  { %1262 = vmatpush3.bf16.msra.mxu0 %v1261_v59 }
 0x121   :  { %1264 = vmatprep.subr.bf16.mxu0 %v1263_v60  ;;  %v608_v60 = vld [vmem:[#allocation2] sm:$0xff] }
 0x124   :  { %1266 = vmatpush3.bf16.msra.mxu0 %v1265_v3 }
 0x125   :  { %1291 = vmatprep.subr.bf16.mxu0 %v1735_v0 }
 0x127   :  { %326 = vmatmul.mubr.f32.vlgmr.msra.gmra.mrb[0].mxu0 %v220_v5  ;;  %v707_v5 = vld [vmem:[#allocation14 + $0x18] sm:$0xff] }
 0x128   :  { %1184 = vmatprep.mubr.msk.f32.mxu0 %vm1736_vm0, %v1737_v12  ;;  %1293 = vmatpush3.bf16.msra.mxu0 %v1292_v16  ;;  %v1316_v6 = vpack.c.bf16 %v707_v5, %v706_v4  ;;  %v1325_v16 = vpack.c.bf16 %v796_v15, %v795_v14  ;;  %v912_v14 = vld [vmem:[#allocation20 + $0xf0] sm:$0xff] }
 0x129   :  { %1294 = vmatprep.subr.bf16.mxu0 %v1735_v0 }
 0x12c   :  { %1296 = vmatpush3.bf16.msra.mxu0 %v1295_v18 }
 0x12d   :  { %1297 = vmatprep.subr.bf16.mxu0 %v1735_v0 }
 0x130   :  { %1299 = vmatpush3.bf16.msra.mxu0 %v1298_v21 }
 0x131   :  { %1300 = vmatprep.subr.bf16.mxu0 %v1735_v0 }
 0x134   :  { %1302 = vmatpush3.bf16.msra.mxu0 %v1301_v31  ;;  %v889_v31 = vld [vmem:[#allocation20 + $0x38] sm:$0xff] }
 0x135   :  { %1303 = vmatprep.subr.bf16.mxu0 %v1735_v0 }
 0x1fa   :  { %v1082_v22 = vpop.f32.mrb[0].mxu0 }
 0x1fb   :  { %v1083_v24 = vpop.f32.mrb[1].mxu0 }
 0x1fc   :  { %v1084_v25 = vadd.f32 %v1083_v24, %v1082_v22  ;;  %v798_v24 = vld [vmem:[#allocation17 + $0x38] sm:$0xff] }
 0x1fe   :  { %v328_v26 = vadd.f32 %v1084_v25, %v1036_v23  ;;  %v797_v23 = vld [vmem:[#allocation17 + $0x30] sm:$0xff] }
 0x1ff   :  { %v1328_v25 = vpack.c.bf16 %v798_v24, %v797_v23 }
 0x200   :  { %vm331_vm1 = vcmp.ge.f32.partialorder %v328_v26, 0.0  ;;  %v332_v27 = vmul.f32 0.01, %v328_v26 }
 0x202   :  { %v333_v28 = vsel %vm331_vm1, %v328_v26, %v332_v27  ;;  %v883_v26 = vld [vmem:[#allocation20 + $0x8] sm:$0xff]  ;;  %v885_v27 = vld [vmem:[#allocation20 + $0x18] sm:$0xff] }
 0x203   :  { %1166 = vmatmul.mubr.f32.vlgmr.msra.gmra.mrb[0].mxu1 %v333_v28  ;;  %v882_v28 = vld [vmem:[#allocation20] sm:$0xff]  ;;  %v1330_v29 = vpack.c.bf16 %v885_v27, %v883_v26 }
 0x204   :  { %1202 = vmatprep.mubr.msk.f32.mxu1 %vm1736_vm0, %v1737_v12  ;;  %1311 = vmatpush3.bf16.msra.mxu1 %v1310_v57  ;;  %v902_v57 = vld [vmem:[#allocation20 + $0xa0] sm:$0xff] }
 0x205   :  { %1312 = vmatprep.subr.bf16.mxu1 %v1735_v0 }
 0x2d6   :  { %v423_v33 = vpop.f32.mrb[0].mxu1 }
 0x2d7   :  { %v424_v36 = vadd.f32 %v1037_v32, %v423_v33  ;;  %v1167_v37 = vpop.f32.mrb[1].mxu1  ;;  %v1334_v33 = vpack.c.bf16 %v889_v31, %v887_v30 }
 0x2d8   :  { %v893_v37 = vld [vmem:[#allocation20 + $0x58] sm:$0xff] }
 0x2d9   :  { %vm427_vm2 = vcmp.ge.f32.partialorder %v424_v36, 0.0  ;;  %v428_v38 = vmul.f32 0.01, %v424_v36 }
 0x2db   :  { %v429_v40 = vsel %vm427_vm2, %v424_v36, %v428_v38  ;;  %v891_v36 = vld [vmem:[#allocation20 + $0x48] sm:$0xff] }
 0x2dc   :  { %1185 = vmatmul.mubr.msk.f32.vlgmr.msra.gmra.mrb[2].mxu0 %vm445_vm3, %v429_v40  ;;  %v1338_v38 = vpack.c.bf16 %v893_v37, %v891_v36  ;;  %v892_v40 = vld [vmem:[#allocation20 + $0x50] sm:$0xff] }
 0x2dd   :  { %1305 = vmatpush3.bf16.msra.mxu0 %v1304_v39  ;;  %1195 = vmatprep.mubr.msk.f32.mxu0 %vm1736_vm0, %v1737_v12  ;;  %v890_v39 = vld [vmem:[#allocation20 + $0x40] sm:$0xff] }
 0x2de   :  { %1306 = vmatprep.subr.bf16.mxu0 %v1735_v0 }
 0x2e1   :  { %1308 = vmatpush3.bf16.msra.mxu0 %v1307_v43  ;;  %v1340_v43 = vpack.c.bf16 %v892_v40, %v890_v39 }
 0x2e2   :  { %1318 = vmatprep.subr.bf16.mxu0 %v1735_v0 }
 0x3af   :  { %v515_v45 = vpop.f32.mrb[2].mxu0 }
 0x3b0   :  { %v516_v46 = vadd.f32 %v1038_v44, %v515_v45  ;;  %v1186_v47 = vpop.f32.mrb[3].mxu0  ;;  %v1342_v44 = vpack.c.bf16 %v897_v42, %v895_v41  ;;  %v894_v45 = vld [vmem:[#allocation20 + $0x60] sm:$0xff] }
 0x3b1   :  { %v899_v47 = vld [vmem:[#allocation20 + $0x88] sm:$0xff] }
 0x3b2   :  { %vm519_vm4 = vcmp.ge.f32.partialorder %v516_v46, 0.0  ;;  %v520_v48 = vmul.f32 0.01, %v516_v46 }
 0x3b4   :  { %v521_v49 = vsel %vm519_vm4, %v516_v46, %v520_v48  ;;  %v896_v46 = vld [vmem:[#allocation20 + $0x70] sm:$0xff]  ;;  %v901_v48 = vld [vmem:[#allocation20 + $0x98] sm:$0xff] }
 0x3b5   :  { %1196 = vmatmul.mubr.msk.f32.vlgmr.msra.gmra.mrb[4].mxu0 %vm533_vm5, %v521_v49  ;;  %v1344_v49 = vpack.c.bf16 %v896_v46, %v894_v45 }
 0x3b6   :  { %1232 = vmatprep.mubr.msk.f32.mxu0 %vm1736_vm0, %v1737_v12  ;;  %1320 = vmatpush3.bf16.msra.mxu0 %v1319_v10  ;;  %v913_v10 = vld [vmem:[#allocation20 + $0xf8] sm:$0xff] }
 0x3b7   :  { %1321 = vmatprep.subr.bf16.mxu0 %v1735_v0  ;;  %v1358_v11 = vpack.c.bf16 %v913_v10, %v911_v9 }
 0x3ba   :  { %1323 = vmatpush3.bf16.msra.mxu0 %v1322_v13  ;;  %v910_v13 = vld [vmem:[#allocation20 + $0xe0] sm:$0xff] }
 0x3bb   :  { %1324 = vmatprep.subr.bf16.mxu0 %v1735_v0  ;;  %v1360_v15 = vpack.c.bf16 %v912_v14, %v910_v13 }
 0x3be   :  { %1326 = vmatpush3.bf16.msra.mxu0 %v1325_v16  ;;  %v1046_v16 = vld [vmem:[#allocation19] ss:$0 sm:$0xff] }
 0x3bf   :  { %1327 = vmatprep.subr.bf16.mxu0 %v1735_v0 }
 0x3c2   :  { %1329 = vmatpush3.bf16.msra.mxu0 %v1328_v25  ;;  %v914_v25 = vld [vmem:[#allocation22] sm:$0x3] }
 0x488   :  { %v603_v51 = vpop.f32.mrb[4].mxu0 }
 0x489   :  { %v604_v52 = vadd.f32 %v1040_v50, %v603_v51  ;;  %v1197_v53 = vpop.f32.mrb[5].mxu0  ;;  %v1346_v50 = vpack.c.bf16 %v901_v48, %v899_v47  ;;  %v898_v51 = vld [vmem:[#allocation20 + $0x80] sm:$0xff] }
 0x48a   :  { %v903_v53 = vld [vmem:[#allocation20 + $0xa8] sm:$0xff] }
 0x48b   :  { %607 = vst.msk [vmem:[%s2258_s19] sm:$0xff] %vm533_vm5, %v604_v52  ;;  %v609_v54 = vmul.f32 0.5, %v604_v52  ;;  %s1017_s19 = sshll.u32 %s1739_s10, 4  ;;  %s1018_s19 = int_to_ptr.vmem [resolvable:$true] %s1017_s19 }
 0x48c   :  { %s1680_s16 = scalar_lea.vmem %s1018_s19, 256  ;;  %p1685_p7 = scmp.lt.s32.totalorder %s1018_s19, %s1018_s19 }
 0x48d   :  { %v610_v58 = vmul.f32 1.442695, %v609_v54  ;;  %v905_v54 = vld [vmem:[#allocation20 + $0xb8] sm:$0xff]  ;;  %p1681_p6 = scmp.ne.s32.totalorder %s1018_s19, %s1680_s16  ;;  %p1686_p8 = scmp.lt.s32.totalorder %s1680_s16, %s1680_s16 }
 0x48e   :  { %v1350_v56 = vpack.c.bf16 %v905_v54, %v903_v53 }
 0x48f   :  { %1384 = vpow2.f32 %v610_v58  ;;  %v904_v58 = vld [vmem:[#allocation20 + $0xb0] sm:$0xff]  ;;  %p1687_p9 = por %p1686_p8, %p1685_p7 }
 0x490   :  { %v1352_v61 = vpack.c.bf16 %v904_v58, %v902_v57 }
 0x491   :  { %p1688_p10 = pnand %p1687_p9, %p1681_p6 }
 0x499   :  { %v1385_v59 = vpop.eup %1384 }
 0x49a   :  { %613 = vrot.lane.b32.xlu0 %v1385_v59, %s1738_s11  ;;  %v907_v59 = vld [vmem:[#allocation20 + $0xc8] sm:$0xff] }
 0x50c   :  { %v614_v63 = vpop.permute.xlu0 %613 }
 0x50d   :  { %v616_v1 = vmul.f32 %v614_v63, %v608_v60  ;;  %v909_v60 = vld [vmem:[#allocation20 + $0xd8] sm:$0xff]  ;;  %v906_v63 = vld [vmem:[#allocation20 + $0xc0] sm:$0xff] }
 0x50e   :  { %v1354_v62 = vpack.c.bf16 %v909_v60, %v907_v59 }
 0x50f   :  { %v617_v3 = vadd.f32 %v616_v1, %v604_v52  ;;  %v900_v52 = vld [vmem:[#allocation20 + $0x90] sm:$0xff] }
 0x510   :  { %v1348_v55 = vpack.c.bf16 %v900_v52, %v898_v51  ;;  %v908_v1 = vld [vmem:[#allocation20 + $0xd0] sm:$0xff] }
 0x511   :  { %1203 = vmatmul.mubr.msk.f32.vlgmr.msra.gmra.mrb[2].mxu1 %vm627_vm6, %v617_v3  ;;  %v1044_v3 = vld [vmem:[#allocation16] ss:$0 sm:$0xff] }
 0x512   :  { %1314 = vmatpush3.bf16.msra.mxu1 %v1313_v2  ;;  %1213 = vmatprep.mubr.msk.f32.mxu1 %vm1736_vm0, %v1737_v12  ;;  %v1356_v2 = vpack.c.bf16 %v908_v1, %v906_v63 }
 0x513   :  { %1315 = vmatprep.subr.bf16.mxu1 %v1735_v0  ;;  %v884_v0 = vld [vmem:[#allocation20 + $0x10] sm:$0xff] }
 0x514   :  { %v1332_v32 = vpack.c.bf16 %v884_v0, %v882_v28 }
 0x516   :  { %1317 = vmatpush3.bf16.msra.mxu1 %v1316_v6 }
 0x517   :  { %1331 = vmatprep.subr.bf16.mxu1 %v1330_v29 }
 0x5e4   :  { %v697_v18 = vpop.f32.mrb[2].mxu1 }
 0x5e5   :  { %v698_v19 = vadd.f32 %v1042_v17, %v697_v18  ;;  %v1204_v20 = vpop.f32.mrb[3].mxu1 }
 0x5e7   :  { %vm701_vm7 = vcmp.ge.f32.partialorder %v698_v19, 0.0  ;;  %v702_v21 = vmul.f32 0.01, %v698_v19 }
 0x5e9   :  { %v703_v22 = vsel %vm701_vm7, %v698_v19, %v702_v21 }
 0x5ea   :  { %1214 = vmatmul.mubr.msk.f32.vlgmr.msra.gmra.mrb[4].mxu1 %vm533_vm5, %v703_v22  ;;  %v916_v22 = vlaneseq }
 0x5eb   :  { %990 = vmatprep.mubr.f32.mxu1 %v1737_v12  ;;  %1333 = vmatpush1.bf16.msra.mxu1 %v1332_v32  ;;  %v1336_v12 = vpack.c.bf16 %v888_v35, %v886_v34 }
 0x5ec   :  { %1335 = vmatprep.subr.bf16.mxu1 %v1334_v33  ;;  %v917_v23 = vshrl.u32 %v916_v22, 7 }
 0x5ee   :  { %v918_v24 = vsub.s32 0, %v917_v23  ;;  %v922_v26 = vsub.s32 1, %v917_v23 }
 0x5ef   :  { %1337 = vmatpush1.bf16.msra.mxu1 %v1336_v12 }
 0x5f0   :  { %1339 = vmatprep.subr.bf16.mxu1 %v1338_v38  ;;  %v919_v27 = vrot.slane %v914_v25, %v918_v24  ;;  %v923_v28 = vrot.slane %v914_v25, %v922_v26 }
 0x5f3   :  { %1341 = vmatpush1.bf16.msra.mxu1 %v1340_v43 }
 0x5f4   :  { %1343 = vmatprep.subr.bf16.mxu1 %v1342_v44 }
 0x5f7   :  { %1345 = vmatpush1.bf16.msra.mxu1 %v1344_v49 }
 0x5f8   :  { %1347 = vmatprep.subr.bf16.mxu1 %v1346_v50 }
 0x5fb   :  { %1349 = vmatpush1.bf16.msra.mxu1 %v1348_v55 }
 0x5fc   :  { %1351 = vmatprep.subr.bf16.mxu1 %v1350_v56 }
 0x5ff   :  { %1353 = vmatpush1.bf16.msra.mxu1 %v1352_v61 }
 0x600   :  { %1355 = vmatprep.subr.bf16.mxu1 %v1354_v62 }
 0x603   :  { %1357 = vmatpush1.bf16.msra.mxu1 %v1356_v2 }
 0x604   :  { %1359 = vmatprep.subr.bf16.mxu1 %v1358_v11 }
 0x607   :  { %1361 = vmatpush1.bf16.msra.mxu1 %v1360_v15 }
 0x6bd   :  { %v784_v4 = vpop.f32.mrb[4].mxu1 }
 0x6be   :  { %v785_v5 = vadd.f32 %v1044_v3, %v784_v4  ;;  %v1215_v6 = vpop.f32.mrb[5].mxu1 }
 0x6c0   :  { %vm788_vm8 = vcmp.ge.f32.partialorder %v785_v5, 0.0  ;;  %v789_v7 = vmul.f32 0.01, %v785_v5 }
 0x6c2   :  { %v790_v8 = vsel %vm788_vm8, %v785_v5, %v789_v7 }
 0x6c3   :  { %1233 = vmatmul.mubr.msk.f32.vlgmr.msra.gmra.mrb[6].mxu0 %vm445_vm3, %v790_v8 }
 0x796   :  { %v875_v17 = vpop.f32.mrb[6].mxu0 }
 0x797   :  { %v876_v18 = vadd.f32 %v1046_v16, %v875_v17  ;;  %v1234_v19 = vpop.f32.mrb[7].mxu0 }
 0x799   :  { %vm879_vm9 = vcmp.ge.f32.partialorder %v876_v18, 0.0  ;;  %v880_v20 = vmul.f32 0.01, %v876_v18 }
 0x79b   :  { %v881_v21 = vsel %vm879_vm9, %v876_v18, %v880_v20 }
 0x79c   :  { %991 = vmatmul.mubr.f32.vlgmr.msra.gmra.mrb[6].mxu1 %v881_v21 }
 0x86f   :  { %v992_v29 = vpop.f32.mrb[6].mxu1 }
 0x870   :  { %v993_v0 = vadd.f32 %v992_v29, %v919_v27  ;;  %v994_v30 = vpop.f32.mrb[7].mxu1 }
 0x871   :  { %v995_v31 = vadd.f32 %v994_v30, %v923_v28 }
 0x872   :  { %v1048_v32 = vmul.f32 -1.442695, %v993_v0 }
 0x873   :  { %v1049_v33 = vmul.f32 -1.442695, %v995_v31 }
 0x874   :  { %1386 = vpow2.f32 %v1048_v32 }
 0x875   :  { %1388 = vpow2.f32 %v1049_v33 }
 0x87e   :  { %v1387_v34 = vpop.eup %1386 }
 0x87f   :  { %v1389_v35 = vpop.eup %1388  ;;  %v1003_v36 = vadd.f32 1.0, %v1387_v34 }
 0x880   :  { %v1004_v37 = vadd.f32 1.0, %v1389_v35 }
 0x881   :  { %1390 = vrcp.f32 %v1003_v36 }
 0x882   :  { %1392 = vrcp.f32 %v1004_v37 }
 0x88b   :  { %v1391_v12 = vpop.eup %1390 }
 0x88c   :  { %v1393_v38 = vpop.eup %1392  ;;  %1009 = vst [vmem:[#allocation23] sm:$0xff] %v1391_v12 }
 0x88d   :  { %1010 = vst [vmem:[#allocation23 + $0x8] sm:$0xff] %v1393_v38 }
 0x88e   :  { %1691 = shalt.err (!%p1688_p10)
}
 0x88f   :  { %s1692_s1 = scalar_lea.hbm %s2257_s18, 256 }
 0x890   :  { %p1693_p11 = scmp.ne.s32.totalorder %s2257_s18, %s1692_s1  ;;  %p1696_p12 = scmp.lt.u32.totalorder %s1692_s1, %s2257_s18 }
 0x892   :  { %p1698_p13 = pnand %p1696_p12, %p1693_p11 }
 0x894   :  { %1701 = shalt.err (!%p1698_p13)
}
 0x895   :  { %1020 = dma.vmem_to_hbm [thread:$0]  %s1018_s19, 256, %s2257_s18, [#allocation4]  }
 0x896   :  { %1716 = dma.done.wait [#allocation4], 256  }
 0x897   :  { %1717 = vsyncadd [#allocation4], 4294967040 }
 0x898   :  { %1028 = vsyncpa [#allocation3], 1 }
 0x899   :  { %1029 = vsyncpa [#allocation6], 1 }
 0x89a   :  { %1030 = vsyncpa [#allocation9], 1 }
 0x89b   :  { %1031 = vsyncpa [#allocation12], 1 }
 0x89c   :  { %1032 = vsyncpa [#allocation15], 1 }
 0x89d   :  { %1033 = vsyncpa [#allocation18], 1 }
 0x89e   :  { %1034 = vsyncpa [#allocation21], 1 }
 0x89f   :  { %1035 = vsyncpa [#allocation4], 1 }

</bundles_post_ra>
